<compile_context>
chip_gen: v5e
topology: v5e:2x2
jax: 0.10.0
libtpu: 0.0.40
codegen_flags: <defaults>
</compile_context>

<pallas_src>
import functools

import jax
import jax.numpy as jnp
from jax.experimental import pallas as pl
from jax.experimental.pallas import tpu as pltpu


_LANE = 128
_SUBLANE = 8


def _round_up(x, m):
    return (x + m - 1) // m * m


def _vmem_plan():
    """Generation-aware VMEM budgets.

    Returns (pipeline_budget_bytes, vmem_limit_bytes, tm_cap).
    v7x: 64 MiB VMEM per TensorCore -> conservative budget.
    v5e/v6e: 128 MiB -> larger activation tiles to amortize per-step overhead.
    """
    try:
        cap = int(getattr(pltpu.get_tpu_info(), "vmem_capacity_bytes"))
    except Exception:  # query unavailable -> assume the smallest (v7x-class)
        cap = 64 * 1024 * 1024
    if cap <= 64 * 1024 * 1024:
        return 24 * 1024 * 1024, 48 * 1024 * 1024, 2048
    return 48 * 1024 * 1024, 96 * 1024 * 1024, 4096


def _linear_kernel(x_ref, w_ref, b_ref, o_ref):
    # x_ref: (TM, K)  w_ref: (K, TN)  b_ref: (1, TN)  o_ref: (TM, TN)
    acc = jnp.dot(x_ref[...], w_ref[...], preferred_element_type=jnp.float32)
    o_ref[...] = (acc + b_ref[...].astype(jnp.float32)).astype(o_ref.dtype)


def _tiled_linear(x2d, w_t, b2d, *, vmem_budget_bytes=None):
    """y = x2d @ w_t + b2d with w_t of shape (K, N), b2d of shape (1, N)."""
    m, k = x2d.shape
    kw, n = w_t.shape
    assert kw == k, (kw, k)

    budget, vmem_limit, tm_cap = _vmem_plan()
    if vmem_budget_bytes is not None:  # test / tuning hook
        budget = vmem_budget_bytes

    x_sz = x2d.dtype.itemsize
    w_sz = w_t.dtype.itemsize
    out_dtype = x2d.dtype
    o_sz = jnp.dtype(out_dtype).itemsize
    flops = 2 * m * k * n

    # ---------------- Primary path: whole weight resident, 1-D M grid -------
    resident = 2 * (k * n + n) * w_sz          # weight + bias (2-buffer safe)
    per_row = 2 * (k * x_sz + n * o_sz)        # x tile + out tile, 2 buffers
    if resident + _SUBLANE * per_row <= budget:
        tm = (budget - resident) // per_row
        tm = max(_SUBLANE, min(tm_cap, (tm // _SUBLANE) * _SUBLANE))
        if tm >= m:
            tm = m                             # full-extent block is legal
        bytes_accessed = m * k * x_sz + (k * n + n) * w_sz + m * n * o_sz
        return pl.pallas_call(
            _linear_kernel,
            out_shape=jax.ShapeDtypeStruct((m, n), out_dtype),
            grid=(pl.cdiv(m, tm),),
            in_specs=[
                pl.BlockSpec((tm, k), lambda i: (i, 0)),
                pl.BlockSpec((k, n), lambda i: (0, 0)),   # resident weight
                pl.BlockSpec((1, n), lambda i: (0, 0)),   # resident bias
            ],
            out_specs=pl.BlockSpec((tm, n), lambda i: (i, 0)),
            compiler_params=pltpu.CompilerParams(
                dimension_semantics=("parallel",),        # v7x: split M on 2 TCs
                vmem_limit_bytes=vmem_limit,
            ),
            cost_estimate=pl.CostEstimate(
                flops=flops, bytes_accessed=bytes_accessed, transcendentals=0),
        )(x2d, w_t, b2d)

    # ---------------- Fallback: weight too large for VMEM -> tile N ---------
    # N-tile axis outermost so each weight tile is DMA'd once and stays
    # resident across the whole inner M sweep; TN is a 128-multiple dividing
    # the padded N so every store is full lane width.
    n_pad = _round_up(n, _LANE)
    if n_pad != n:
        w_t = jnp.pad(w_t, ((0, 0), (0, n_pad - n)))
        b2d = jnp.pad(b2d, ((0, 0), (0, n_pad - n)))
    tn = _LANE
    for cand in range(_LANE, n_pad + 1, _LANE):
        if n_pad % cand == 0 and 2 * (k * cand + cand) * w_sz <= budget // 2:
            tn = cand
    resident = 2 * (k * tn + tn) * w_sz
    per_row = 2 * (k * x_sz + tn * o_sz)
    tm = (budget - resident) // per_row
    tm = max(_SUBLANE, min(tm_cap, (tm // _SUBLANE) * _SUBLANE))
    if tm >= m:
        tm = m
    n_tiles = n_pad // tn
    bytes_accessed = (n_tiles * m * k * x_sz + (k * n_pad + n_pad) * w_sz
                      + m * n * o_sz)
    return pl.pallas_call(
        _linear_kernel,
        out_shape=jax.ShapeDtypeStruct((m, n), out_dtype),
        grid=(n_tiles, pl.cdiv(m, tm)),
        in_specs=[
            pl.BlockSpec((tm, k), lambda j, i: (i, 0)),
            pl.BlockSpec((k, tn), lambda j, i: (0, j)),
            pl.BlockSpec((1, tn), lambda j, i: (0, j)),
        ],
        out_specs=pl.BlockSpec((tm, tn), lambda j, i: (i, j)),
        compiler_params=pltpu.CompilerParams(
            dimension_semantics=("parallel", "parallel"),
            vmem_limit_bytes=vmem_limit,
        ),
        cost_estimate=pl.CostEstimate(
            flops=flops, bytes_accessed=bytes_accessed, transcendentals=0),
    )(x2d, w_t, b2d)


def prepare_linear_params(weight, bias, dtype=None):
    """One-time parameter prep (do OUTSIDE the per-step forward).

    Takes PyTorch-layout weight (output_dim, K) and bias (output_dim,) and
    returns the transposed weight (K, output_dim) and bias (1, output_dim).
    Pass dtype=jnp.bfloat16 to stream weights/activations/outputs in bf16
    (roughly halves HBM traffic on this bandwidth-bound layer); the matmul
    still accumulates in f32 and the bias stays f32.
    """
    w_t = jnp.asarray(weight).T
    if dtype is not None:
        w_t = w_t.astype(dtype)
    b2d = jnp.asarray(bias).reshape(1, -1).astype(jnp.float32)
    return w_t, b2d


@functools.partial(jax.jit, static_argnames=("stride",))
def feature_encoder_forward(x, lengths, w_t, b2d, *, stride):
    """FeatureEncoder.forward.

    Args:
        x:        (B, T, D)
        lengths:  (B,) int32 or None
        w_t, b2d: prepared params from prepare_linear_params
        stride:   time-reduction stride (static)

    Returns:
        (out, out_lengths): out is (B, T//stride, output_dim) in the compute
        dtype (w_t's dtype); out_lengths is (B,) int or None.
    """
    B, T, D = x.shape
    num_frames = T - (T % stride)
    t_out = num_frames // stride
    k = D * stride

    # _TimeReduction: truncate + reshape.  Metadata-only when T % stride == 0.
    # TODO(synk): when T % stride != 0 this slice is one extra HBM pass over x;
    # folding the per-batch tail skip into the kernel's x index_map would
    # remove it (only worthwhile when D is lane-aligned).
    x2d = x[:, :num_frames, :].reshape(B * t_out, k)
    if x2d.dtype != w_t.dtype:
        x2d = x2d.astype(w_t.dtype)   # bf16 streaming path when params are bf16

    out2d = _tiled_linear(x2d, w_t, b2d)
    out = out2d.reshape(B, t_out, w_t.shape[1])

    if lengths is None:
        return out, None
    return out, lengths // stride


def _init_linear_params(key, in_features, out_features):
    """Deterministic init mimicking nn.Linear default (uniform +-1/sqrt(fan_in))."""
    kw, kb = jax.random.split(key)
    bound = 1.0 / jnp.sqrt(jnp.float32(in_features))
    weight = jax.random.uniform(
        kw, (out_features, in_features), jnp.float32, -bound, bound
    )
    bias = jax.random.uniform(kb, (out_features,), jnp.float32, -bound, bound)
    return weight, bias


if __name__ == "__main__":
    key = jax.random.PRNGKey(0)

    # ---- Config 1: small, non-lane-aligned output dim. ---------------------
    B, T, D, stride, output_dim = 2, 16, 8, 2, 32
    kx, kp, key = jax.random.split(key, 3)
    x = jax.random.normal(kx, (B, T, D), dtype=jnp.float32)
    lengths = jnp.array([T, T - 3], dtype=jnp.int32)
    weight, bias = _init_linear_params(kp, D * stride, output_dim)

    w_t, b2d = prepare_linear_params(weight, bias)
    out, out_lengths = feature_encoder_forward(x, lengths, w_t, b2d, stride=stride)
    out = jax.block_until_ready(out)
    out_lengths = jax.block_until_ready(out_lengths)

    num_frames = T - (T % stride)
    ref = x[:, :num_frames, :].reshape(B, num_frames // stride, D * stride)
    ref = ref @ weight.T + bias
    assert out.shape == (B, T // stride, output_dim), out.shape
    assert out_lengths.shape == (B,)
    assert jnp.allclose(out, ref, atol=1e-5, rtol=1e-5)
    assert jnp.array_equal(out_lengths, lengths // stride)

    # lengths=None path.
    out_none, none_len = feature_encoder_forward(x, None, w_t, b2d, stride=stride)
    jax.block_until_ready(out_none)
    assert none_len is None
    assert jnp.allclose(out_none, ref, atol=1e-5, rtol=1e-5)

    # ---- Config 2: MXU-aligned dims, T % stride != 0 (truncation path). ----
    B2, T2, D2, stride2, out_dim2 = 2, 33, 64, 4, 256
    kx2, kp2, key = jax.random.split(key, 3)
    x2 = jax.random.normal(kx2, (B2, T2, D2), dtype=jnp.float32)
    lengths2 = jnp.array([T2, 17], dtype=jnp.int32)
    weight2, bias2 = _init_linear_params(kp2, D2 * stride2, out_dim2)

    w_t2, b2d2 = prepare_linear_params(weight2, bias2)
    o2, l2 = feature_encoder_forward(x2, lengths2, w_t2, b2d2, stride=stride2)
    o2 = jax.block_until_ready(o2)

    nf2 = T2 - (T2 % stride2)
    ref2 = x2[:, :nf2, :].reshape(B2, nf2 // stride2, D2 * stride2)
    ref2 = ref2 @ weight2.T + bias2
    assert o2.shape == (B2, T2 // stride2, out_dim2), o2.shape
    assert jnp.allclose(o2, ref2, atol=1e-3, rtol=1e-3)
    assert jnp.array_equal(l2, lengths2 // stride2)

    # ---- Config 2b: bf16 streaming path (f32 accumulator in-kernel). -------
    w_t2b, b2d2b = prepare_linear_params(weight2, bias2, dtype=jnp.bfloat16)
    o2b, _ = feature_encoder_forward(x2, lengths2, w_t2b, b2d2b, stride=stride2)
    o2b = jax.block_until_ready(o2b)
    assert o2b.dtype == jnp.bfloat16
    assert jnp.allclose(o2b.astype(jnp.float32), ref2, atol=1e-1, rtol=5e-2)

    # ---- Config 3: multi-M-tile primary path (forced small VMEM budget). ---
    kx3, kp3, key = jax.random.split(key, 3)
    m3, k3, n3 = 320, 128, 200            # partial last M block, masked N store
    x3 = jax.random.normal(kx3, (m3, k3), dtype=jnp.float32)
    weight3, bias3 = _init_linear_params(kp3, k3, n3)
    w_t3, b2d3 = prepare_linear_params(weight3, bias3)
    o3 = _tiled_linear(x3, w_t3, b2d3, vmem_budget_bytes=600 * 1024)
    o3 = jax.block_until_ready(o3)
    assert jnp.allclose(o3, x3 @ weight3.T + bias3, atol=1e-3, rtol=1e-3)

    # ---- Config 4: fallback N-tiled path (forced tiny VMEM budget). --------
    kx4, kp4, key = jax.random.split(key, 3)
    m4, k4, n4 = 320, 128, 500
    x4 = jax.random.normal(kx4, (m4, k4), dtype=jnp.float32)
    weight4, bias4 = _init_linear_params(kp4, k4, n4)
    w_t4, b2d4 = prepare_linear_params(weight4, bias4)
    o4 = _tiled_linear(x4, w_t4, b2d4, vmem_budget_bytes=400 * 1024)
    o4 = jax.block_until_ready(o4)
    assert jnp.allclose(o4, x4 @ weight4.T + bias4, atol=1e-3, rtol=1e-3)

    print("KERNEL_OK")
</pallas_src>

<mosaic_0001>
module attributes {stable_mosaic.version = 11 : i64} {
  func.func @_linear_kernel(%arg0: i32, %arg1: memref<16x16xf32, #tpu.memory_space<vmem>>, %arg2: memref<16x32xf32, #tpu.memory_space<vmem>>, %arg3: memref<1x32xf32, #tpu.memory_space<vmem>>, %arg4: memref<16x32xf32, #tpu.memory_space<vmem>>) attributes {dimension_semantics = [#tpu.dimension_semantics<parallel>], iteration_bounds = array<i64: 1>, scalar_prefetch = 0 : i64, scratch_operands = 0 : i64, tpu.core_type = #tpu.core_type<tc>, window_params = [{transform_indices = @transform_0, window_bounds = array<i64: 16, 16>}, {pipeline_mode = #tpu.pipeline_mode<synchronous>, transform_indices = @transform_1, window_bounds = array<i64: 16, 32>}, {pipeline_mode = #tpu.pipeline_mode<synchronous>, transform_indices = @transform_2, window_bounds = array<i64: 1, 32>}, {transform_indices = @transform_3, window_bounds = array<i64: 16, 32>}]} {
    %c0 = arith.constant 0 : index
    %c0_0 = arith.constant 0 : index
    %0 = vector.load %arg1[%c0, %c0_0] : memref<16x16xf32, #tpu.memory_space<vmem>>, vector<16x16xf32>
    %c0_1 = arith.constant 0 : index
    %c0_2 = arith.constant 0 : index
    %1 = vector.load %arg2[%c0_1, %c0_2] : memref<16x32xf32, #tpu.memory_space<vmem>>, vector<16x32xf32>
    %cst = arith.constant dense<0.000000e+00> : vector<16x32xf32>
    %2 = tpu.matmul %0, %1, %cst {dimension_numbers = #tpu.dot_dimension_numbers<[1], [0], [0], [1], [0, 0, 1, 1], [], []>} : vector<16x16xf32>, vector<16x32xf32>, vector<16x32xf32> -> vector<16x32xf32>
    %c0_3 = arith.constant 0 : index
    %c0_4 = arith.constant 0 : index
    %3 = vector.load %arg3[%c0_3, %c0_4] : memref<1x32xf32, #tpu.memory_space<vmem>>, vector<1x32xf32>
    %4 = vector.broadcast %3 : vector<1x32xf32> to vector<16x32xf32>
    %5 = arith.addf %2, %4 : vector<16x32xf32>
    %c0_5 = arith.constant 0 : index
    %c0_6 = arith.constant 0 : index
    %6 = vector.load %arg4[%c0_5, %c0_6] : memref<16x32xf32, #tpu.memory_space<vmem>>, vector<16x32xf32>
    tpu.vector_store %arg4[%c0_5, %c0_6], %5 {strides = array<i32>} : memref<16x32xf32, #tpu.memory_space<vmem>>, vector<16x32xf32>,
    return
  }
  func.func @transform_0(%arg0: i32) -> (i32, i32) {
    %c0_i32 = arith.constant 0 : i32
    %c0_i32_0 = arith.constant 0 : i32
    return %arg0, %c0_i32 : i32, i32
  }
  func.func @transform_1(%arg0: i32) -> (i32, i32) {
    %c0_i32 = arith.constant 0 : i32
    %c0_i32_0 = arith.constant 0 : i32
    %c0_i32_1 = arith.constant 0 : i32
    return %c0_i32, %c0_i32_0 : i32, i32
  }
  func.func @transform_2(%arg0: i32) -> (i32, i32) {
    %c0_i32 = arith.constant 0 : i32
    %c0_i32_0 = arith.constant 0 : i32
    %c0_i32_1 = arith.constant 0 : i32
    return %c0_i32, %c0_i32_0 : i32, i32
  }
  func.func @transform_3(%arg0: i32) -> (i32, i32) {
    %c0_i32 = arith.constant 0 : i32
    %c0_i32_0 = arith.constant 0 : i32
    return %arg0, %c0_i32 : i32, i32
  }
}

</mosaic_0001>

<bundles_post_ra>
// kernel: feature_encoder_forward.1
= control target key start
LH: loop header
LB: loop body
LE: loop exit
PB: predicated region body
PF: predicated region fallthrough
CT: control target
= control target key end

     0   :  { %vm23_vm0 = vcmask 130048   ;;  %s149_s0 = inlined_call_operand.vmem [shape: f32[16,16], index: 0, kind: input, shape index: {}]   ;;  %s150_s1 = inlined_call_operand.vmem [shape: f32[16,32], index: 1, kind: input, shape index: {}]   ;;  %s151_s2 = inlined_call_operand.vmem [shape: f32[1,32], index: 2, kind: input, shape index: {}]   ;;  %s152_s3 = inlined_call_operand.hbm [shape: f32[16,32], index: 3, kind: output, shape index: {}]  }
   0x1   :  { %v18_v0 = vld [vmem:[%s150_s1 + $0x8] sm:$0xff]  ;;  %v17_v1 = vld [vmem:[%s150_s1] sm:$0xff] }
   0x2   :  { %44 = vmatpush.msra.mxu0 %v18_v0  ;;  %76 = vmatpush.msra.mxu1 %v18_v0  ;;  %v15_v2 = vld [vmem:[%s149_s0] sm:$0xff]  ;;  %v16_v3 = vld [vmem:[%s149_s0 + $0x8] sm:$0xff] }
   0x3   :  { %8 = vsyncpa [#allocation3], 0  ;;  %v81_v4 = vld [vmem:[%s151_s2] ss:$0 sm:$0xff]  ;;  %s108_s1 = smov [#allocation2]   ;;  %s62_s25 = sshll.u32 %s152_s3, 4  ;;  %s63_s25 = int_to_ptr.hbm [resolvable:$true] %s62_s25 }
   0x4   :  { %45 = vmatpush.msra.mxu0 %v17_v1  ;;  %77 = vmatpush.msra.mxu1 %v17_v1  ;;  %s60_s22 = sshll.u32 %s108_s1, 4  ;;  %vm53_vm1 = vcmask 261120   ;;  %s109_s0 = smov 128   ;;  %s61_s22 = int_to_ptr.vmem [resolvable:$true] %s60_s22 }
   0x5   :  { %74 = vmatmul.msk.f32.vlgmr.msra.gmra.mxu0 %vm23_vm0, %v15_v2  ;;  %75 = vmatmul.msk.f32.vlgmr.msra.gmra.mxu1 %vm23_vm0, %v16_v3  ;;  %s110_s26 = smov 8  }
  0x82   :  { %v47_v5 = vpop.f32.mrf.mxu0  ;;  %v50_v6 = vpop.f32.mrf.mxu1 }
  0x83   :  { %v48_v7 = vadd.f32 %v81_v4, %v47_v5  ;;  %v51_v8 = vadd.f32 %v81_v4, %v50_v6 }
  0x85   :  { %54 = vst.msk [vmem:[#allocation2] sm:$0xff] %vm53_vm1, %v48_v7 }
  0x86   :  { %55 = vst.msk [vmem:[#allocation2 + $0x8] sm:$0xff] %vm53_vm1, %v51_v8 }
  0x87   :  { %68 = dma.vmem_to_hbm [thread:$0]  %s61_s22, 256, %s63_s25, [#allocation3], %s109_s0, %s109_s0, %s110_s26  }
  0x88   :  { %106 = dma.done.wait [#allocation3], 256  }
  0x89   :  { %107 = vsyncadd [#allocation3], 4294967040 }
  0x8a   :  { %73 = vsyncpa [#allocation3], 1 }

</bundles_post_ra>
